<compile_context>
chip_gen: v5e
topology: v5e:2x2
jax: 0.10.0
libtpu: 0.0.40
codegen_flags: <defaults>
</compile_context>

<pallas_src>
import functools

import jax
import jax.numpy as jnp
from jax.experimental import pallas as pl
from jax.experimental.pallas import tpu as pltpu


def _round_up(x: int, m: int) -> int:
    return ((x + m - 1) // m) * m


def _ipow(x, n: int):
    """x**n for a small positive integer n via squaring (short VALU chain)."""
    result = None
    base = x
    while n > 0:
        if n & 1:
            result = base if result is None else result * base
        n >>= 1
        if n:
            base = base * base
    return result


def _gem_pool_kernel(p_ref, h_ref, m_ref, invd_ref, o_ref, acc_ref, *,
                     epsilon: float, p_int):
    """GeM pooling over the sequence axis (S innermost grid axis).

    p_ref    : SMEM [1]             learnable exponent p (runtime-p path only)
    h_ref    : VMEM [tb, ts, th]    hidden-state tile
    m_ref    : VMEM [tb, 1, ts]     attention-mask tile ({0,1} float)
    invd_ref : VMEM [tb, 1]         1 / clip(mask.sum(S), eps)   (precomputed)
    o_ref    : VMEM [tb, th]        pooled output tile
    acc_ref  : VMEM [tb, th] f32    running sum over S of mask * clamp(h)^p
    """
    si = pl.program_id(2)
    eps = jnp.float32(epsilon)

    @pl.when(si == 0)
    def _init():
        acc_ref[...] = jnp.zeros_like(acc_ref)

    h = h_ref[...].astype(jnp.float32)                # (tb, ts, th)
    m = m_ref[...].astype(jnp.float32)                # (tb, 1, ts)

    clamped = jnp.maximum(h, eps)                     # clamp(min=eps) > 0
    if p_int is not None:
        # Static small-integer p: VPU multiplies only (no EUP exp/log).
        powered = _ipow(clamped, p_int)
    else:
        # Runtime p: exp(p*log(x)) is safe since clamped >= eps > 0.
        powered = jnp.exp(p_ref[0] * jnp.log(clamped))

    # Mask applied AFTER pow (m**p == m for {0,1} masks); the masked reduction
    # over S is a batched matvec -> runs on the MXU, freeing VPU/XLU slots.
    part = jnp.einsum("bqs,bsh->bqh", m, powered,
                      preferred_element_type=jnp.float32,
                      precision=jax.lax.Precision.HIGHEST)     # (tb, 1, th)
    acc_ref[...] += part[:, 0, :]

    @pl.when(si == pl.num_programs(2) - 1)
    def _finalize():
        ret = acc_ref[...] * invd_ref[...]            # (tb, th) * (tb, 1)
        if p_int is not None:
            inv_p = jnp.float32(1.0 / p_int)
        else:
            inv_p = 1.0 / p_ref[0]
        o_ref[...] = jnp.power(ret, inv_p).astype(o_ref.dtype)


def _vmem_budgets(budget_override=None):
    """(hidden double-buffer budget, vmem_limit cap) per TPU generation."""
    try:
        cap = int(pltpu.get_tpu_info().vmem_capacity_bytes)
    except Exception:
        cap = 64 << 20                       # conservative (v7x-sized) fallback
    if cap >= (100 << 20):                   # v5e / v6e: 128 MiB VMEM
        hidden_budget, limit_cap = 48 << 20, 96 << 20
    else:                                    # v7x: 64 MiB VMEM per core
        hidden_budget, limit_cap = 24 << 20, 48 << 20
    if budget_override is not None:
        hidden_budget = int(budget_override)
    return hidden_budget, limit_cap


def gem_text_pooling(last_hidden_state: jax.Array,
                     attention_mask: jax.Array,
                     p: jax.Array,
                     epsilon: float = 1e-6,
                     p_static=None,
                     _hidden_budget_bytes=None) -> jax.Array:
    """GeM pooling over dim=1.

    last_hidden_state: [B,S,H]; attention_mask: [B,S] ({0,1}); p: [1].
    `p_static`: optional Python float equal to p -- pass it (e.g. 3.0) when
    calling under jax.jit so the integer-p VPU fast path stays reachable
    (otherwise p is a tracer and the exp/log path is used).
    """
    B, S, H = last_hidden_state.shape
    out_dtype = last_hidden_state.dtype
    in_bytes = jnp.dtype(last_hidden_state.dtype).itemsize
    out_bytes = jnp.dtype(out_dtype).itemsize

    # --- static-integer-p fast path ----------------------------------------
    p_int = None
    if p_static is not None:
        p_val = float(p_static)
    else:
        try:
            p_val = float(jnp.asarray(p).reshape(-1)[0])   # concrete (eager)
        except Exception:                                   # tracer under jit
            p_val = None
    if (p_val is not None and p_val > 0
            and abs(p_val - round(p_val)) < 1e-6 and 1 <= round(p_val) <= 8):
        p_int = int(round(p_val))

    hidden_budget, limit_cap = _vmem_budgets(_hidden_budget_bytes)

    # --- tile selection: avoid padding the [B,S,H] stream when possible -----
    # tb: full B (mask-sublane rule satisfied by a full dim), or 8 when B is a
    # larger multiple of 8 (smaller blocks + >=2 parallel B tiles).
    if B % 8 == 0 and B > 8:
        tb, B_pad = 8, B
    elif B > 128:                          # huge unaligned batch: pad to 8s
        tb, B_pad = 8, _round_up(B, 8)
    else:
        tb, B_pad = B, B

    # th: prefer full H -> fully contiguous HBM reads, no H padding.
    if H <= 128 or 2 * tb * 128 * H * in_bytes <= hidden_budget:
        th, H_pad = H, H
    else:
        H_pad = _round_up(H, 128)
        th = 128
        for cand in (2048, 1024, 512, 256):
            if H_pad % cand == 0 and 2 * tb * 128 * cand * in_bytes <= hidden_budget:
                th = cand
                break

    # Keep >=2 "parallel" grid points when cheap (both v7x TensorCores busy).
    if B_pad // tb == 1 and th == H and H % 256 == 0:
        th = H // 2

    # ts: full S if the double-buffered hidden block fits, else a 128-multiple
    # tile (preferring exact divisors of S to avoid padding the big tensor).
    if 2 * tb * S * th * in_bytes <= hidden_budget:
        ts, S_pad = S, S
    else:
        max_ts = (hidden_budget // (2 * tb * th * in_bytes)) // 128 * 128
        max_ts = max(128, min(max_ts, 4096))
        ts = None
        for cand in range(max_ts, 127, -128):
            if S % cand == 0:
                ts = cand
                break
        if ts is None:
            ts = max_ts
        S_pad = _round_up(S, ts)

    # --- wrapper-side prep ----------------------------------------------
    h = last_hidden_state
    m = attention_mask.astype(jnp.float32)
    if (B_pad, S_pad, H_pad) != (B, S, H):
        h = jnp.pad(h, ((0, B_pad - B), (0, S_pad - S), (0, H_pad - H)))
    if (B_pad, S_pad) != (B, S):
        m = jnp.pad(m, ((0, B_pad - B), (0, S_pad - S)))   # pad tokens masked out

    # Mask sum over S hoisted out of the hot loop (tiny [B] reduce).
    msum = jnp.sum(m, axis=1, keepdims=True)                        # [B,1]
    inv_denom = (1.0 / jnp.maximum(msum, jnp.float32(epsilon))).astype(jnp.float32)

    m = m.reshape(B_pad, 1, S_pad)                                  # [B,1,S]
    p_arr = jnp.asarray(p, dtype=jnp.float32).reshape(1)

    grid = (B_pad // tb, H_pad // th, S_pad // ts)

    footprint = (2 * tb * ts * th * in_bytes            # hidden double-buffer
                 + 2 * tb * 8 * ts * 4                  # mask (sublane padded)
                 + 2 * tb * 128 * 4                     # inv_denom (lane padded)
                 + 2 * tb * max(th, 128) * out_bytes    # output double-buffer
                 + tb * max(th, 128) * 4)               # accumulator scratch
    vmem_limit = int(max(32 << 20, min(limit_cap, footprint + (16 << 20))))

    kernel = functools.partial(_gem_pool_kernel,
                               epsilon=float(epsilon), p_int=p_int)

    out = pl.pallas_call(
        kernel,
        out_shape=jax.ShapeDtypeStruct((B_pad, H_pad), out_dtype),
        grid=grid,
        in_specs=[
            pl.BlockSpec(memory_space=pltpu.SMEM),                          # p
            pl.BlockSpec((tb, ts, th), lambda bi, hi, si: (bi, si, hi)),    # hidden
            pl.BlockSpec((tb, 1, ts), lambda bi, hi, si: (bi, 0, si)),      # mask
            pl.BlockSpec((tb, 1), lambda bi, hi, si: (bi, 0)),              # 1/denom
        ],
        out_specs=pl.BlockSpec((tb, th), lambda bi, hi, si: (bi, hi)),
        scratch_shapes=[pltpu.VMEM((tb, th), jnp.float32)],                 # GeM acc
        compiler_params=pltpu.CompilerParams(
            dimension_semantics=("parallel", "parallel", "arbitrary"),
            vmem_limit_bytes=vmem_limit,
        ),
    )(p_arr, h, m, inv_denom)

    if (B_pad, H_pad) != (B, H):
        out = out[:B, :H]
    return out


def _reference(last_hidden_state, attention_mask, p, epsilon=1e-6):
    """Pure-JAX reference mirroring the PyTorch forward exactly."""
    mask_e = jnp.broadcast_to(attention_mask[..., None].astype(jnp.float32),
                              last_hidden_state.shape)
    clamped = jnp.maximum(last_hidden_state.astype(jnp.float32), epsilon)
    x = jnp.sum(jnp.power(clamped * mask_e, p), axis=1)
    denom = jnp.maximum(jnp.sum(mask_e, axis=1), epsilon)
    return jnp.power(x / denom, 1.0 / p)


if __name__ == "__main__":
    key = jax.random.PRNGKey(0)
    k1, k2, k3 = jax.random.split(key, 3)

    # Test 1: module-sized shapes (B=2,S=8,H=32), p=3.0 (init value), eager.
    # Exercises the static-integer-p path + full-dim (no-pad) blocks.
    B, S, H = 2, 8, 32
    hidden = jax.random.normal(k1, (B, S, H), dtype=jnp.float32)
    attention_mask = jnp.array([[1] * S, [1] * (S - 3) + [0] * 3], dtype=jnp.float32)
    p_param = jnp.ones((1,), dtype=jnp.float32) * 3.0

    out = jax.block_until_ready(gem_text_pooling(hidden, attention_mask, p_param))
    ref = _reference(hidden, attention_mask, 3.0)
    assert out.shape == (B, H)
    assert jnp.allclose(out, ref, atol=2e-3, rtol=2e-3), (
        f"test1 max abs diff {jnp.max(jnp.abs(out - ref))}")

    # Test 1b: same inputs under jax.jit with a static p -> integer fast path
    # stays reachable under jit (p itself is a tracer).
    jitted = jax.jit(functools.partial(gem_text_pooling, p_static=3.0))
    out_j = jax.block_until_ready(jitted(hidden, attention_mask, p_param))
    assert jnp.allclose(out_j, ref, atol=2e-3, rtol=2e-3), (
        f"test1b max abs diff {jnp.max(jnp.abs(out_j - ref))}")

    # Test 2: non-(8,128)-aligned S/H and non-integer p, under jit -> runtime
    # exp/log path; full-dim S/H blocks mean zero padding of the big tensor.
    B2, S2, H2 = 3, 300, 160
    hidden2 = jax.random.normal(k2, (B2, S2, H2), dtype=jnp.float32)
    lens = jnp.array([300, 257, 64])
    mask2 = (jnp.arange(S2)[None, :] < lens[:, None]).astype(jnp.float32)
    p_param2 = jnp.array([2.5], dtype=jnp.float32)

    out2 = jax.block_until_ready(jax.jit(gem_text_pooling)(hidden2, mask2, p_param2))
    ref2 = _reference(hidden2, mask2, 2.5)
    assert out2.shape == (B2, H2)
    assert jnp.allclose(out2, ref2, atol=2e-3, rtol=2e-3), (
        f"test2 max abs diff {jnp.max(jnp.abs(out2 - ref2))}")

    # Test 3: artificially tiny VMEM budget to force S/H tiling (multi-step
    # accumulation over S, accumulator re-init across H tiles, S padding).
    B3, S3, H3 = 2, 300, 256
    hidden3 = jax.random.normal(k3, (B3, S3, H3), dtype=jnp.float32)
    lens3 = jnp.array([300, 123])
    mask3 = (jnp.arange(S3)[None, :] < lens3[:, None]).astype(jnp.float32)
    out3 = jax.block_until_ready(
        gem_text_pooling(hidden3, mask3, p_param, _hidden_budget_bytes=256 * 1024))
    ref3 = _reference(hidden3, mask3, 3.0)
    assert out3.shape == (B3, H3)
    assert jnp.allclose(out3, ref3, atol=2e-3, rtol=2e-3), (
        f"test3 max abs diff {jnp.max(jnp.abs(out3 - ref3))}")

    print("KERNEL_OK")
</pallas_src>

<mosaic_0001>
module attributes {stable_mosaic.version = 11 : i64} {
  func.func @_gem_pool_kernel(%arg0: i32, %arg1: i32, %arg2: i32, %arg3: memref<1xf32, #tpu.memory_space<smem>>, %arg4: memref<2x8x32xf32, #tpu.memory_space<vmem>>, %arg5: memref<2x1x8xf32, #tpu.memory_space<vmem>>, %arg6: memref<2x1xf32, #tpu.memory_space<vmem>>, %arg7: memref<2x32xf32, #tpu.memory_space<vmem>>, %arg8: memref<2x32xf32, #tpu.memory_space<vmem>>) attributes {dimension_semantics = [#tpu.dimension_semantics<parallel>, #tpu.dimension_semantics<parallel>, #tpu.dimension_semantics<arbitrary>], iteration_bounds = array<i64: 1, 1, 1>, scalar_prefetch = 0 : i64, scratch_operands = 1 : i64, tpu.core_type = #tpu.core_type<tc>, window_params = [{transform_indices = @transform_0, window_bounds = array<i64: 1>}, {transform_indices = @transform_1, window_bounds = array<i64: 2, 8, 32>}, {transform_indices = @transform_2, window_bounds = array<i64: 2, 1, 8>}, {transform_indices = @transform_3, window_bounds = array<i64: 2, 1>}, {transform_indices = @transform_4, window_bounds = array<i64: 2, 32>}]} {
    %c0_i32 = arith.constant 0 : i32
    %0 = arith.cmpi eq, %arg2, %c0_i32 : i32
    %1 = arith.extui %0 : i1 to i32
    %c0_i32_0 = arith.constant 0 : i32
    %2 = arith.cmpi ne, %1, %c0_i32_0 : i32
    scf.if %2 {
      %cst_13 = arith.constant 0.000000e+00 : f32
      %17 = vector.broadcast %cst_13 : f32 to vector<2x32xf32>
      %c0_14 = arith.constant 0 : index
      %c0_15 = arith.constant 0 : index
      %18 = vector.load %arg8[%c0_14, %c0_15] : memref<2x32xf32, #tpu.memory_space<vmem>>, vector<2x32xf32>
      tpu.vector_store %arg8[%c0_14, %c0_15], %17 {strides = array<i32>} : memref<2x32xf32, #tpu.memory_space<vmem>>, vector<2x32xf32>,
    } else {
    }
    %c0 = arith.constant 0 : index
    %c0_1 = arith.constant 0 : index
    %c0_2 = arith.constant 0 : index
    %3 = vector.load %arg4[%c0, %c0_1, %c0_2] : memref<2x8x32xf32, #tpu.memory_space<vmem>>, vector<2x8x32xf32>
    %c0_3 = arith.constant 0 : index
    %c0_4 = arith.constant 0 : index
    %c0_5 = arith.constant 0 : index
    %4 = vector.load %arg5[%c0_3, %c0_4, %c0_5] : memref<2x1x8xf32, #tpu.memory_space<vmem>>, vector<2x1x8xf32>
    %cst = arith.constant 9.99999997E-7 : f32
    %5 = vector.broadcast %cst : f32 to vector<2x8x32xf32>
    %6 = arith.maximumf %3, %5 : vector<2x8x32xf32>
    %7 = arith.mulf %6, %6 : vector<2x8x32xf32>
    %8 = arith.mulf %6, %7 : vector<2x8x32xf32>
    "tpu.trace_start"() <{level = 10 : i32, message = "bqs,bsh->bqh"}> : () -> ()
    %cst_6 = arith.constant dense<0.000000e+00> : vector<2x1x32xf32>
    %9 = tpu.matmul %4, %8, %cst_6 {dimension_numbers = #tpu.dot_dimension_numbers<[2], [1], [1], [2], [0, 0, 0, 1, 1, 2], [0], [0]>, precision = #tpu.contract_precision<fp32>} : vector<2x1x8xf32>, vector<2x8x32xf32>, vector<2x1x32xf32> -> vector<2x1x32xf32>
    "tpu.trace_stop"() : () -> ()
    %c0_7 = arith.constant 0 : index
    %c0_8 = arith.constant 0 : index
    %10 = vector.load %arg8[%c0_7, %c0_8] : memref<2x32xf32, #tpu.memory_space<vmem>>, vector<2x32xf32>
    %11 = vector.shape_cast %9 : vector<2x1x32xf32> to vector<2x32xf32>
    %12 = arith.addf %10, %11 : vector<2x32xf32>
    %c0_9 = arith.constant 0 : index
    %c0_10 = arith.constant 0 : index
    %13 = vector.load %arg8[%c0_9, %c0_10] : memref<2x32xf32, #tpu.memory_space<vmem>>, vector<2x32xf32>
    tpu.vector_store %arg8[%c0_9, %c0_10], %12 {strides = array<i32>} : memref<2x32xf32, #tpu.memory_space<vmem>>, vector<2x32xf32>,
    %c0_i32_11 = arith.constant 0 : i32
    %14 = arith.cmpi eq, %arg2, %c0_i32_11 : i32
    %15 = arith.extui %14 : i1 to i32
    %c0_i32_12 = arith.constant 0 : i32
    %16 = arith.cmpi ne, %15, %c0_i32_12 : i32
    scf.if %16 {
      %c0_13 = arith.constant 0 : index
      %c0_14 = arith.constant 0 : index
      %17 = vector.load %arg8[%c0_13, %c0_14] : memref<2x32xf32, #tpu.memory_space<vmem>>, vector<2x32xf32>
      %c0_15 = arith.constant 0 : index
      %c0_16 = arith.constant 0 : index
      %18 = vector.load %arg6[%c0_15, %c0_16] : memref<2x1xf32, #tpu.memory_space<vmem>>, vector<2x1xf32>
      %19 = vector.broadcast %18 : vector<2x1xf32> to vector<2x32xf32>
      %20 = arith.mulf %17, %19 : vector<2x32xf32>
      %cst_17 = arith.constant 0.333333343 : f32
      %21 = vector.broadcast %cst_17 : f32 to vector<2x32xf32>
      %22 = math.powf %20, %21 : vector<2x32xf32>
      %c0_18 = arith.constant 0 : index
      %c0_19 = arith.constant 0 : index
      %23 = vector.load %arg7[%c0_18, %c0_19] : memref<2x32xf32, #tpu.memory_space<vmem>>, vector<2x32xf32>
      tpu.vector_store %arg7[%c0_18, %c0_19], %22 {strides = array<i32>} : memref<2x32xf32, #tpu.memory_space<vmem>>, vector<2x32xf32>,
    } else {
    }
    return
  }
  func.func @transform_0(%arg0: i32, %arg1: i32, %arg2: i32) -> i32 {
    %c0_i32 = arith.constant 0 : i32
    %c0_i32_0 = arith.constant 0 : i32
    return %c0_i32 : i32
  }
  func.func @transform_1(%arg0: i32, %arg1: i32, %arg2: i32) -> (i32, i32, i32) {
    %c0_i32 = arith.constant 0 : i32
    return %arg0, %arg2, %arg1 : i32, i32, i32
  }
  func.func @transform_2(%arg0: i32, %arg1: i32, %arg2: i32) -> (i32, i32, i32) {
    %c0_i32 = arith.constant 0 : i32
    %c0_i32_0 = arith.constant 0 : i32
    return %arg0, %c0_i32, %arg2 : i32, i32, i32
  }
  func.func @transform_3(%arg0: i32, %arg1: i32, %arg2: i32) -> (i32, i32) {
    %c0_i32 = arith.constant 0 : i32
    %c0_i32_0 = arith.constant 0 : i32
    return %arg0, %c0_i32 : i32, i32
  }
  func.func @transform_4(%arg0: i32, %arg1: i32, %arg2: i32) -> (i32, i32) {
    %c0_i32 = arith.constant 0 : i32
    return %arg0, %arg1 : i32, i32
  }
}

</mosaic_0001>

<bundles_post_ra>
// kernel: tpu_custom_call.1
= control target key start
LH: loop header
LB: loop body
LE: loop exit
PB: predicated region body
PF: predicated region fallthrough
CT: control target
= control target key end

     0   :  { %10 = vsyncpa [#allocation5], 0  ;;  %s526_s0 = inlined_call_operand.<no memory space> [shape: f32[1], index: 0, kind: input, shape index: {}]   ;;  %s527_s1 = inlined_call_operand.hbm [shape: f32[2,8,32], index: 1, kind: input, shape index: {}]   ;;  %s528_s2 = inlined_call_operand.vmem [shape: f32[2,1,8], index: 2, kind: input, shape index: {}]   ;;  %s529_s3 = inlined_call_operand.vmem [shape: f32[2,1], index: 3, kind: input, shape index: {}]   ;;  %s530_s4 = inlined_call_operand.hbm [shape: f32[2,32], index: 4, kind: output, shape index: {}]  }
   0x1   :  { %11 = vsyncpa [#allocation6], 0  ;;  %s18_s17 = sshll.u32 %s527_s1, 4  ;;  %s477_s0 = smov [#allocation4]   ;;  %s19_s17 = int_to_ptr.hbm [resolvable:$true] %s18_s17 }
   0x2   :  { %s20_s18 = sshll.u32 %s477_s0, 4  ;;  %s478_s19 = smov 128   ;;  %s21_s18 = int_to_ptr.vmem [resolvable:$true] %s20_s18 }
   0x3   :  { %s479_s20 = smov 8  }
   0x4   :  { %26 = dma.hbm_to_vmem [thread:$0]  %s19_s17, 256, %s21_s18, [#allocation5], %s478_s19, %s478_s19, %s479_s20  }
   0x5   :  { %473 = dma.done.wait [#allocation5], 256  }
   0x6   :  { %474 = vsyncadd [#allocation5], 4294967040  ;;  %vm51_vm0 = vcmask 64512   ;;  %v41_v0 = vld [vmem:[#allocation4] sm:$0xff]  ;;  %v43_v1 = vld [vmem:[%s528_s2] sm:$0x1] }
   0x7   :  { %v44_v2 = vld [vmem:[%s528_s2 + $0x1] sm:$0x1]  ;;  %v45_v3 = vmax.f32 %v41_v0, 1e-06  ;;  %v53_v4 = vsel %vm51_vm0, %v43_v1, 0  ;;  %v42_v6 = vld [vmem:[#allocation4 + $0x8] sm:$0xff] }
   0x8   :  { %v202_v5 = vsel %vm51_vm0, %v44_v2, 0  ;;  %v72_v7 = vand.u32 4294901760, %v53_v4  ;;  %v46_v9 = vmax.f32 %v42_v6, 1e-06  ;;  %v480_v11 = vmov 0   ;;  %s482_s2 = smov [#allocation7]  }
   0x9   :  { %v221_v8 = vand.u32 4294901760, %v202_v5  ;;  %v47_v10 = vmul.f32 %v45_v3, %v45_v3  ;;  %420 = vset.pattern.permute.xlu0 %v480_v11  ;;  %v364_v12 = vld [vmem:[%s529_s3] sm:$0x3]  ;;  %vm39_vm1 = vcmask 254976   ;;  %v481_v34 = vmov 0.0   ;;  %s378_s3 = sshll.u32 %s482_s2, 4  ;;  %s379_s3 = int_to_ptr.vmem [resolvable:$true] %s378_s3 }
   0xa   :  { %v73_v13 = vsub.f32 %v53_v4, %v72_v7  ;;  %v48_v15 = vmul.f32 %v46_v9, %v46_v9  ;;  %367 = vperm.xlu0 %420, %v364_v12   ;;  %40 = vst.msk [vmem:[#allocation2] sm:$0x3] %vm39_vm1, %v481_v34  ;;  %vm354_vm2 = vcmask 1041409   ;;  %s380_s28 = sshll.u32 %s530_s4, 4  ;;  %s381_s28 = int_to_ptr.hbm [resolvable:$true] %s380_s28 }
   0xb   :  { %v222_v14 = vsub.f32 %v202_v5, %v221_v8  ;;  %v49_v16 = vmul.f32 %v47_v10, %v45_v3 }
   0xc   :  { %v74_v17 = vand.u32 4294901760, %v73_v13  ;;  %v50_v18 = vmul.f32 %v48_v15, %v46_v9 }
   0xd   :  { %v70_v19 = vand.u32 4294901760, %v49_v16  ;;  %v223_v22 = vand.u32 4294901760, %v222_v14 }
   0xe   :  { %v75_v20 = vsub.f32 %v73_v13, %v74_v17  ;;  %v219_v21 = vand.u32 4294901760, %v50_v18 }
   0xf   :  { %v97_v23 = vsub.f32 %v49_v16, %v70_v19  ;;  %71 = vmatpush.msra.mxu0 %v70_v19  ;;  %147 = vmatpush.msra.mxu3 %v70_v19  ;;  %v224_v28 = vsub.f32 %v222_v14, %v223_v22 }
  0x10   :  { %v76_v24 = vand.u32 4294901760, %v75_v20  ;;  %151 = vmatmul.f32.vlgmr.msra.gmra.mxu3 %v74_v17  ;;  %v246_v25 = vsub.f32 %v50_v18, %v219_v21 }
  0x11   :  { %124 = vmatpush.msra.mxu2 %v97_v23  ;;  %v98_v26 = vand.u32 4294901760, %v97_v23  ;;  %v225_v33 = vand.u32 4294901760, %v224_v28  ;;  %v350_v58 = vld [vmem:[#allocation2] sm:$0x3] }
  0x12   :  { %127 = vmatmul.f32.vlgmr.msra.gmra.mxu2 %v73_v13  ;;  %77 = vmatmul.f32.vlgmr.msra.gmra.mxu0 %v76_v24  ;;  %v247_v27 = vand.u32 4294901760, %v246_v25 }
  0x13   :  { %220 = vmatpush.msrb.mxu2 %v219_v21  ;;  %v99_v29 = vsub.f32 %v97_v23, %v98_v26  ;;  %173 = vmatpush.msrb.mxu0 %v98_v26 }
  0x14   :  { %v248_v30 = vsub.f32 %v246_v25, %v247_v27 }
  0x15   :  { %322 = vmatpush.msra.mxu2 %v247_v27  ;;  %273 = vmatpush.msra.mxu0 %v246_v25  ;;  %v100_v31 = vand.u32 4294901760, %v99_v29 }
  0x16   :  { %v249_v32 = vand.u32 4294901760, %v248_v30 }
  0x17   :  { %101 = vmatpush.msra.mxu1 %v100_v31 }
  0x18   :  { %250 = vmatpush.msrb.mxu3 %v249_v32  ;;  %103 = vmatmul.f32.vlgmr.msra.gmra.mxu1 %v72_v7 }
  0x19   :  { %195 = vmatpush.msrb.mxu1 %v70_v19  ;;  %252 = vmatmul.f32.vlgmr.msrb.gmra.mxu3 %v221_v8 }
  0x1a   :  { %226 = vmatmul.f32.vlgmr.msrb.gmra.mxu2 %v225_v33  ;;  %175 = vmatmul.f32.vlgmr.msrb.gmra.mxu0 %v72_v7 }
  0x1b   :  { %344 = vmatpush.msra.mxu3 %v219_v21  ;;  %296 = vmatpush.msra.mxu1 %v219_v21 }
  0x20   :  { %197 = vmatmul.f32.vlgmr.msrb.gmra.mxu1 %v72_v7 }
  0x21   :  { %346 = vmatmul.f32.vlgmr.msra.gmra.mxu3 %v221_v8 }
  0x22   :  { %324 = vmatmul.f32.vlgmr.msra.gmra.mxu2 %v221_v8  ;;  %276 = vmatmul.f32.vlgmr.msra.gmra.mxu0 %v222_v14 }
  0x28   :  { %300 = vmatmul.f32.vlgmr.msra.gmra.mxu1 %v223_v22 }
  0x7c   :  { %v368_v61 = vpop.permute.xlu0 %367 }
  0x8f   :  { %v78_v35 = vpop.f32.mrf.mxu0 }
  0x93   :  { %v152_v36 = vpop.f32.mrf.mxu3 }
  0x95   :  { %v104_v37 = vpop.f32.mrf.mxu1  ;;  %v128_v38 = vpop.f32.mrf.mxu2 }
  0x96   :  { %v105_v40 = vadd.f32 %v104_v37, %v78_v35 }
  0x97   :  { %v176_v39 = vpop.f32.mrf.mxu0 }
  0x98   :  { %v129_v44 = vadd.f32 %v128_v38, %v105_v40 }
  0x9a   :  { %v153_v47 = vadd.f32 %v152_v36, %v129_v44 }
  0x9c   :  { %v253_v41 = vpop.f32.mrf.mxu3  ;;  %v177_v53 = vadd.f32 %v176_v39, %v153_v47 }
  0x9d   :  { %v198_v42 = vpop.f32.mrf.mxu1  ;;  %v227_v43 = vpop.f32.mrf.mxu2 }
  0x9e   :  { %v254_v45 = vadd.f32 %v253_v41, %v227_v43  ;;  %v199_v56 = vadd.f32 %v198_v42, %v177_v53 }
  0x9f   :  { %v277_v46 = vpop.f32.mrf.mxu0 }
  0xa0   :  { %v278_v48 = vadd.f32 %v277_v46, %v254_v45 }
  0xa4   :  { %v347_v52 = vpop.f32.mrf.mxu3 }
  0xa5   :  { %v301_v49 = vpop.f32.mrf.mxu1  ;;  %v325_v50 = vpop.f32.mrf.mxu2 }
  0xa6   :  { %v302_v51 = vadd.f32 %v301_v49, %v278_v48 }
  0xa8   :  { %v326_v54 = vadd.f32 %v325_v50, %v302_v51 }
  0xaa   :  { %v348_v55 = vadd.f32 %v347_v52, %v326_v54 }
  0xac   :  { %v353_v57 = vrot.slane %v348_v55, 7 }
  0xae   :  { %v355_v59 = vsel %vm354_vm2, %v353_v57, %v199_v56 }
  0xaf   :  { %v357_v60 = vadd.f32 %v355_v59, %v350_v58 }
  0xb1   :  { %359 = vst.msk [vmem:[#allocation2] sm:$0x3] %vm39_vm1, %v357_v60 }
  0xb8   :  { %v363_v62 = vld [vmem:[#allocation2] sm:$0x3] }
  0xb9   :  { %v370_v63 = vmul.f32 %v368_v61, %v363_v62 }
  0xbb   :  { %v392_v0 = vand.u32 2147483647, %v370_v63  ;;  %v409_v12 = vand.u32 2147483648, %v370_v63  ;;  %vm391_vm5 = vcmp.lt.f32.partialorder %v370_v63, 0.0  ;;  %vm390_vm6 = vcmp.eq.f32.partialorder %v370_v63, 0.0 }
  0xbd   :  { %421 = vlog2.f32 %v392_v0  ;;  %vm406_vm3 = vweird.f32 %v392_v0  ;;  %vm408_vm4 = vcmp.eq.f32.partialorder %v392_v0, 0.0  ;;  %vm393_vm7 = vcmp.eq.f32.partialorder %v392_v0, inf }
  0xc3   :  { %v422_v1 = vpop.eup %421 }
  0xc4   :  { %v396_v2 = vmul.f32 -0.33333334, %v422_v1 }
  0xc6   :  { %423 = vpow2.f32 %v396_v2 }
  0xcc   :  { %v424_v3 = vpop.eup %423 }
  0xcd   :  { %v398_v4 = vmul.f32 %v424_v3, %v424_v3 }
  0xcf   :  { %v399_v5 = vmul.f32 %v398_v4, %v392_v0 }
  0xd1   :  { %v400_v6 = vmul.f32 %v399_v5, %v398_v4 }
  0xd3   :  { %v401_v7 = vsub.f32 %v400_v6, %v424_v3 }
  0xd5   :  { %v402_v8 = vmul.f32 -0.33333334, %v401_v7 }
  0xd7   :  { %v403_v9 = vadd.f32 %v424_v3, %v402_v8 }
  0xd9   :  { %v404_v10 = vmul.f32 %v403_v9, %v370_v63 }
  0xdb   :  { %v405_v11 = vmul.f32 %v404_v10, %v403_v9 }
  0xdd   :  { %v407_v13 = vsel %vm406_vm3, %v370_v63, %v405_v11 }
  0xde   :  { %v410_v14 = vsel %vm408_vm4, %v409_v12, %v407_v13 }
  0xdf   :  { %v411_v15 = vsel %vm391_vm5, nan, %v410_v14 }
  0xe0   :  { %v412_v16 = vsel %vm390_vm6, 0.0, %v411_v15 }
  0xe1   :  { %v413_v17 = vsel %vm393_vm7, inf, %v412_v16 }
  0xe2   :  { %372 = vst.msk [vmem:[#allocation7] sm:$0x3] %vm39_vm1, %v413_v17 }
  0xe3   :  { %383 = dma.vmem_to_hbm [thread:$0]  %s379_s3, 32, %s381_s28, [#allocation6]  }
  0xe4   :  { %475 = dma.done.wait [#allocation6], 32  }
  0xe5   :  { %476 = vsyncadd [#allocation6], 4294967264 }
  0xe6   :  { %388 = vsyncpa [#allocation5], 1 }
  0xe7   :  { %389 = vsyncpa [#allocation6], 1 }

</bundles_post_ra>
